<compile_context>
chip_gen: v7x
topology: tpu7x:2x2x1
jax: 0.10.0
libtpu: 0.0.40
codegen_flags: <defaults>
</compile_context>

<pallas_src>
import functools

import jax
import jax.numpy as jnp
from jax.experimental import pallas as pl
from jax.experimental.pallas import tpu as pltpu

LANE = 128


def _round_up(n, m):
    return ((n + m - 1) // m) * m


def _leaky_relu(v):
    # torch.nn.LeakyReLU default negative_slope = 0.01 (valid for slope in (0,1))
    return jnp.maximum(v, v * v.dtype.type(0.01))


def _softplus(v):
    # numerically stable softplus: max(v, 0) + log1p(exp(-|v|))
    return jnp.maximum(v, 0.0) + jnp.log1p(jnp.exp(-jnp.abs(v)))


def _default_act_dtype():
    """bf16 VPU/EUP exist on v6e/v7x; v5e and older lack them -> keep fp32 there."""
    try:
        kind = jax.devices()[0].device_kind.lower()
    except Exception:
        return jnp.float32
    if "v6" in kind or "v7" in kind:
        return jnp.bfloat16
    return jnp.float32


def mlc_kernel(x_ref,
               w1_ref, b1_ref,
               w2_ref, b2_ref,
               w3_ref, b3_ref,
               wh_ref, bh_ref,
               mu_ref, sigma_ref,
               *, n_out, compute_dtype, act_dtype):
    # x arrives fp32 from HBM; cast to the matmul dtype on the VPU (saves an
    # extra HBM pass over x in the wrapper).
    x = x_ref[...].astype(compute_dtype)

    def layer(h_in, w_ref, b_ref):
        # bf16 operands -> MXU, fp32 accumulation; activation in act_dtype
        # (bf16 on v6e/v7x halves VALU work, fp32 on v5e).
        z = jnp.dot(h_in, w_ref[...], preferred_element_type=jnp.float32)
        z = (z + b_ref[...]).astype(act_dtype)
        return _leaky_relu(z).astype(compute_dtype)

    # shared layers: three (Linear + LeakyReLU) blocks (dropout = identity, eval).
    h = layer(x, w1_ref, b1_ref)
    h = layer(h, w2_ref, b2_ref)
    h = layer(h, w3_ref, b3_ref)

    # fused mu/sigma head: one matmul into a lane-padded (TB, HEAD_PAD) slab
    # kept in VMEM/vregs only; activations applied only to the useful lanes.
    z = jnp.dot(h, wh_ref[...], preferred_element_type=jnp.float32) + bh_ref[...]
    mu_ref[...] = _leaky_relu(z[:, :n_out]).astype(mu_ref.dtype)
    sigma_ref[...] = _softplus(z[:, n_out:2 * n_out]).astype(sigma_ref.dtype)


def pack_params(params, compute_dtype=jnp.bfloat16):
    """Zero-pad hidden/head dims to lane multiples, fuse the heads, cast weights.

    Call ONCE (weights are static) and reuse the result across forwards.
    Padding correctness relies on LeakyReLU(0) == 0 keeping padded lanes zero.
    """
    w1, b1 = params["w1"], params["b1"]
    w2, b2 = params["w2"], params["b2"]
    w3, b3 = params["w3"], params["b3"]
    w_mu, b_mu = params["w_mu"], params["b_mu"]
    w_sigma, b_sigma = params["w_sigma"], params["b_sigma"]

    h1, h2, h3 = w1.shape[1], w2.shape[1], w3.shape[1]
    h1p, h2p, h3p = (_round_up(h, LANE) for h in (h1, h2, h3))
    n_out = w_mu.shape[1]
    head_pad = _round_up(2 * n_out, LANE)

    def pad2(a, rows, cols):
        return jnp.pad(a, ((0, rows - a.shape[0]), (0, cols - a.shape[1])))

    w_head = jnp.concatenate([w_mu, w_sigma], axis=1)   # (h3, 2*n_out)
    b_head = jnp.concatenate([b_mu, b_sigma], axis=1)   # (1, 2*n_out)

    # NOTE: bf16 weights + fp32 accumulation deviates slightly from the fp32
    # PyTorch module; keep layer-1 fp32 if tighter parity is ever required.
    return dict(
        w1=pad2(w1, w1.shape[0], h1p).astype(compute_dtype),
        b1=pad2(b1, 1, h1p).astype(jnp.float32),
        w2=pad2(w2, h1p, h2p).astype(compute_dtype),
        b2=pad2(b2, 1, h2p).astype(jnp.float32),
        w3=pad2(w3, h2p, h3p).astype(compute_dtype),
        b3=pad2(b3, 1, h3p).astype(jnp.float32),
        w_head=pad2(w_head, h3p, head_pad).astype(compute_dtype),
        b_head=pad2(b_head, 1, head_pad).astype(jnp.float32),
    )


def stochastic_mlc_forward(x, packed, *, n_out, block_batch=4096,
                           compute_dtype=jnp.bfloat16, act_dtype=None):
    """x: (batch, ..., input_dim) float32; packed: output of pack_params()."""
    if act_dtype is None:
        act_dtype = _default_act_dtype()

    # Mirrors torch's x.squeeze(); note it also squeezes batch==1 / input_dim==1
    # (same latent footgun as the PyTorch module).
    x = jnp.squeeze(x)
    if x.ndim == 1:
        x = x[None, :]
    batch, d_in = x.shape

    # batch tiling: big tiles amortize the ~0.35 us per-grid-step overhead;
    # multiple of 16 for bf16 sublane packing of the in-kernel activations.
    batch16 = _round_up(batch, 16)
    tb = min(block_batch, batch16)
    if batch16 >= 512:
        # keep >=2 grid steps so the "parallel" axis can span both TCs on v7x
        tb = min(tb, _round_up((batch16 + 1) // 2, 16))
    tb = _round_up(tb, 16)

    padded_batch = _round_up(batch, tb)
    if padded_batch != batch:
        x = jnp.pad(x, ((0, padded_batch - batch), (0, 0)))

    grid = (padded_batch // tb,)

    def full_spec(shape):
        return pl.BlockSpec(shape, lambda i: tuple(0 for _ in shape))

    in_specs = [
        pl.BlockSpec((tb, d_in), lambda i: (i, 0)),          # x: tiled over batch
        full_spec(packed["w1"].shape), full_spec(packed["b1"].shape),
        full_spec(packed["w2"].shape), full_spec(packed["b2"].shape),
        full_spec(packed["w3"].shape), full_spec(packed["b3"].shape),
        full_spec(packed["w_head"].shape), full_spec(packed["b_head"].shape),
    ]
    out_specs = (
        pl.BlockSpec((tb, n_out), lambda i: (i, 0)),         # mu
        pl.BlockSpec((tb, n_out), lambda i: (i, 0)),         # sigma
    )
    out_shape = (
        jax.ShapeDtypeStruct((padded_batch, n_out), jnp.float32),
        jax.ShapeDtypeStruct((padded_batch, n_out), jnp.float32),
    )

    mu, sigma = pl.pallas_call(
        functools.partial(mlc_kernel, n_out=n_out,
                          compute_dtype=compute_dtype, act_dtype=act_dtype),
        grid=grid,
        in_specs=in_specs,
        out_specs=out_specs,
        out_shape=out_shape,
        compiler_params=pltpu.CompilerParams(
            dimension_semantics=("parallel",),
            vmem_limit_bytes=32 << 20),
    )(x,
      packed["w1"], packed["b1"],
      packed["w2"], packed["b2"],
      packed["w3"], packed["b3"],
      packed["w_head"], packed["b_head"])

    if padded_batch != batch:
        mu = mu[:batch]
        sigma = sigma[:batch]
    return mu, sigma


def init_params(key, input_dim, neurons, output_dim):
    """Deterministic PyTorch-Linear-style init: U(-1/sqrt(fan_in), 1/sqrt(fan_in)).

    Weights are stored transposed (in_features, out_features) for the kernel.
    """
    dims = [input_dim] + list(neurons)
    params = {}
    keys = jax.random.split(key, 2 * len(neurons) + 4)
    ki = 0
    for i in range(len(neurons)):
        fan_in, fan_out = dims[i], dims[i + 1]
        bound = 1.0 / (fan_in ** 0.5)
        params[f"w{i + 1}"] = jax.random.uniform(
            keys[ki], (fan_in, fan_out), jnp.float32, -bound, bound); ki += 1
        params[f"b{i + 1}"] = jax.random.uniform(
            keys[ki], (1, fan_out), jnp.float32, -bound, bound); ki += 1
    fan_in = neurons[-1]
    bound = 1.0 / (fan_in ** 0.5)
    params["w_mu"] = jax.random.uniform(
        keys[ki], (fan_in, output_dim), jnp.float32, -bound, bound); ki += 1
    params["b_mu"] = jax.random.uniform(
        keys[ki], (1, output_dim), jnp.float32, -bound, bound); ki += 1
    params["w_sigma"] = jax.random.uniform(
        keys[ki], (fan_in, output_dim), jnp.float32, -bound, bound); ki += 1
    params["b_sigma"] = jax.random.uniform(
        keys[ki], (1, output_dim), jnp.float32, -bound, bound); ki += 1
    return params


def reference_forward(x, params):
    """Plain-JAX fp32 reference for correctness check."""
    x = jnp.squeeze(x)
    if x.ndim == 1:
        x = x[None, :]

    def lrelu(v):
        return jnp.maximum(v, 0.01 * v)

    h = lrelu(x @ params["w1"] + params["b1"])
    h = lrelu(h @ params["w2"] + params["b2"])
    h = lrelu(h @ params["w3"] + params["b3"])
    mu = lrelu(h @ params["w_mu"] + params["b_mu"])
    sigma = _softplus(h @ params["w_sigma"] + params["b_sigma"])
    return mu, sigma


if __name__ == "__main__":
    key = jax.random.PRNGKey(0)
    k_x, k_p = jax.random.split(key)

    batch, input_dim, output_dim = 8, 32, 2
    neurons = [64, 64, 64]

    # extra singleton dim to exercise x.squeeze()
    x = jax.random.normal(k_x, (batch, 1, input_dim), jnp.float32)
    params = init_params(k_p, input_dim, neurons, output_dim)

    # pack weights ONCE (static), then jit the forward (pad/cast of x fuses).
    packed = jax.tree_util.tree_map(jax.device_put, pack_params(params))
    fwd = jax.jit(functools.partial(stochastic_mlc_forward, n_out=output_dim))

    mu, sigma = fwd(x, packed)
    jax.block_until_ready((mu, sigma))

    mu_ref, sigma_ref = reference_forward(x, params)
    assert mu.shape == (batch, output_dim) and sigma.shape == (batch, output_dim)
    # bf16 matmul operands with fp32 accumulation -> modest tolerance vs fp32 ref
    assert jnp.allclose(mu, mu_ref, atol=5e-2, rtol=5e-2)
    assert jnp.allclose(sigma, sigma_ref, atol=5e-2, rtol=5e-2)

    print("KERNEL_OK")
</pallas_src>

<mosaic_0001>
module attributes {stable_mosaic.version = 11 : i64} {
  func.func @mlc_kernel(%arg0: i32, %arg1: memref<16x32xf32, #tpu.memory_space<vmem>>, %arg2: memref<32x128xbf16, #tpu.memory_space<vmem>>, %arg3: memref<1x128xf32, #tpu.memory_space<vmem>>, %arg4: memref<128x128xbf16, #tpu.memory_space<vmem>>, %arg5: memref<1x128xf32, #tpu.memory_space<vmem>>, %arg6: memref<128x128xbf16, #tpu.memory_space<vmem>>, %arg7: memref<1x128xf32, #tpu.memory_space<vmem>>, %arg8: memref<128x128xbf16, #tpu.memory_space<vmem>>, %arg9: memref<1x128xf32, #tpu.memory_space<vmem>>, %arg10: memref<16x2xf32, #tpu.memory_space<vmem>>, %arg11: memref<16x2xf32, #tpu.memory_space<vmem>>) attributes {dimension_semantics = [#tpu.dimension_semantics<parallel>], iteration_bounds = array<i64: 1>, scalar_prefetch = 0 : i64, scratch_operands = 0 : i64, tpu.core_type = #tpu.core_type<tc>, window_params = [{transform_indices = @transform_0, window_bounds = array<i64: 16, 32>}, {pipeline_mode = #tpu.pipeline_mode<synchronous>, transform_indices = @transform_1, window_bounds = array<i64: 32, 128>}, {pipeline_mode = #tpu.pipeline_mode<synchronous>, transform_indices = @transform_2, window_bounds = array<i64: 1, 128>}, {pipeline_mode = #tpu.pipeline_mode<synchronous>, transform_indices = @transform_3, window_bounds = array<i64: 128, 128>}, {pipeline_mode = #tpu.pipeline_mode<synchronous>, transform_indices = @transform_4, window_bounds = array<i64: 1, 128>}, {pipeline_mode = #tpu.pipeline_mode<synchronous>, transform_indices = @transform_5, window_bounds = array<i64: 128, 128>}, {pipeline_mode = #tpu.pipeline_mode<synchronous>, transform_indices = @transform_6, window_bounds = array<i64: 1, 128>}, {pipeline_mode = #tpu.pipeline_mode<synchronous>, transform_indices = @transform_7, window_bounds = array<i64: 128, 128>}, {pipeline_mode = #tpu.pipeline_mode<synchronous>, transform_indices = @transform_8, window_bounds = array<i64: 1, 128>}, {transform_indices = @transform_9, window_bounds = array<i64: 16, 2>}, {transform_indices = @transform_10, window_bounds = array<i64: 16, 2>}]} {
    %c0 = arith.constant 0 : index
    %c0_0 = arith.constant 0 : index
    %0 = vector.load %arg1[%c0, %c0_0] : memref<16x32xf32, #tpu.memory_space<vmem>>, vector<16x32xf32>
    %1 = arith.truncf %0 : vector<16x32xf32> to vector<16x32xbf16>
    %c0_1 = arith.constant 0 : index
    %c0_2 = arith.constant 0 : index
    %2 = vector.load %arg2[%c0_1, %c0_2] : memref<32x128xbf16, #tpu.memory_space<vmem>>, vector<32x128xbf16>
    %cst = arith.constant dense<0.000000e+00> : vector<16x128xf32>
    %3 = tpu.matmul %1, %2, %cst {dimension_numbers = #tpu.dot_dimension_numbers<[1], [0], [0], [1], [0, 0, 1, 1], [], []>} : vector<16x32xbf16>, vector<32x128xbf16>, vector<16x128xf32> -> vector<16x128xf32>
    %c0_3 = arith.constant 0 : index
    %c0_4 = arith.constant 0 : index
    %4 = vector.load %arg3[%c0_3, %c0_4] : memref<1x128xf32, #tpu.memory_space<vmem>>, vector<1x128xf32>
    %5 = vector.broadcast %4 : vector<1x128xf32> to vector<16x128xf32>
    %6 = arith.addf %3, %5 : vector<16x128xf32>
    %cst_5 = arith.constant 0.00999999977 : f32
    %7 = vector.broadcast %cst_5 : f32 to vector<16x128xf32>
    %8 = arith.mulf %6, %7 : vector<16x128xf32>
    %9 = arith.maximumf %6, %8 : vector<16x128xf32>
    %10 = arith.truncf %9 : vector<16x128xf32> to vector<16x128xbf16>
    %c0_6 = arith.constant 0 : index
    %c0_7 = arith.constant 0 : index
    %11 = vector.load %arg4[%c0_6, %c0_7] : memref<128x128xbf16, #tpu.memory_space<vmem>>, vector<128x128xbf16>
    %cst_8 = arith.constant dense<0.000000e+00> : vector<16x128xf32>
    %12 = tpu.matmul %10, %11, %cst_8 {dimension_numbers = #tpu.dot_dimension_numbers<[1], [0], [0], [1], [0, 0, 1, 1], [], []>} : vector<16x128xbf16>, vector<128x128xbf16>, vector<16x128xf32> -> vector<16x128xf32>
    %c0_9 = arith.constant 0 : index
    %c0_10 = arith.constant 0 : index
    %13 = vector.load %arg5[%c0_9, %c0_10] : memref<1x128xf32, #tpu.memory_space<vmem>>, vector<1x128xf32>
    %14 = vector.broadcast %13 : vector<1x128xf32> to vector<16x128xf32>
    %15 = arith.addf %12, %14 : vector<16x128xf32>
    %cst_11 = arith.constant 0.00999999977 : f32
    %16 = vector.broadcast %cst_11 : f32 to vector<16x128xf32>
    %17 = arith.mulf %15, %16 : vector<16x128xf32>
    %18 = arith.maximumf %15, %17 : vector<16x128xf32>
    %19 = arith.truncf %18 : vector<16x128xf32> to vector<16x128xbf16>
    %c0_12 = arith.constant 0 : index
    %c0_13 = arith.constant 0 : index
    %20 = vector.load %arg6[%c0_12, %c0_13] : memref<128x128xbf16, #tpu.memory_space<vmem>>, vector<128x128xbf16>
    %cst_14 = arith.constant dense<0.000000e+00> : vector<16x128xf32>
    %21 = tpu.matmul %19, %20, %cst_14 {dimension_numbers = #tpu.dot_dimension_numbers<[1], [0], [0], [1], [0, 0, 1, 1], [], []>} : vector<16x128xbf16>, vector<128x128xbf16>, vector<16x128xf32> -> vector<16x128xf32>
    %c0_15 = arith.constant 0 : index
    %c0_16 = arith.constant 0 : index
    %22 = vector.load %arg7[%c0_15, %c0_16] : memref<1x128xf32, #tpu.memory_space<vmem>>, vector<1x128xf32>
    %23 = vector.broadcast %22 : vector<1x128xf32> to vector<16x128xf32>
    %24 = arith.addf %21, %23 : vector<16x128xf32>
    %cst_17 = arith.constant 0.00999999977 : f32
    %25 = vector.broadcast %cst_17 : f32 to vector<16x128xf32>
    %26 = arith.mulf %24, %25 : vector<16x128xf32>
    %27 = arith.maximumf %24, %26 : vector<16x128xf32>
    %28 = arith.truncf %27 : vector<16x128xf32> to vector<16x128xbf16>
    %c0_18 = arith.constant 0 : index
    %c0_19 = arith.constant 0 : index
    %29 = vector.load %arg8[%c0_18, %c0_19] : memref<128x128xbf16, #tpu.memory_space<vmem>>, vector<128x128xbf16>
    %cst_20 = arith.constant dense<0.000000e+00> : vector<16x128xf32>
    %30 = tpu.matmul %28, %29, %cst_20 {dimension_numbers = #tpu.dot_dimension_numbers<[1], [0], [0], [1], [0, 0, 1, 1], [], []>} : vector<16x128xbf16>, vector<128x128xbf16>, vector<16x128xf32> -> vector<16x128xf32>
    %c0_21 = arith.constant 0 : index
    %c0_22 = arith.constant 0 : index
    %31 = vector.load %arg9[%c0_21, %c0_22] : memref<1x128xf32, #tpu.memory_space<vmem>>, vector<1x128xf32>
    %32 = vector.broadcast %31 : vector<1x128xf32> to vector<16x128xf32>
    %33 = arith.addf %30, %32 : vector<16x128xf32>
    %34 = vector.extract_strided_slice %33 {offsets = [0, 0], sizes = [16, 2], strides = [1, 1]} : vector<16x128xf32> to vector<16x2xf32>
    %cst_23 = arith.constant 0.00999999977 : f32
    %35 = vector.broadcast %cst_23 : f32 to vector<16x2xf32>
    %36 = arith.mulf %34, %35 : vector<16x2xf32>
    %37 = arith.maximumf %34, %36 : vector<16x2xf32>
    %c0_24 = arith.constant 0 : index
    %c0_25 = arith.constant 0 : index
    %38 = vector.load %arg10[%c0_24, %c0_25] : memref<16x2xf32, #tpu.memory_space<vmem>>, vector<16x2xf32>
    tpu.vector_store %arg10[%c0_24, %c0_25], %37 {strides = array<i32>} : memref<16x2xf32, #tpu.memory_space<vmem>>, vector<16x2xf32>,
    %39 = vector.extract_strided_slice %33 {offsets = [0, 2], sizes = [16, 2], strides = [1, 1]} : vector<16x128xf32> to vector<16x2xf32>
    %cst_26 = arith.constant 0.000000e+00 : f32
    %40 = vector.broadcast %cst_26 : f32 to vector<16x2xf32>
    %41 = arith.maximumf %39, %40 : vector<16x2xf32>
    %42 = math.absf %39 : vector<16x2xf32>
    %cst_27 = arith.constant 0.000000e+00 : f32
    %43 = vector.broadcast %cst_27 : f32 to vector<16x2xf32>
    %44 = arith.subf %43, %42 : vector<16x2xf32>
    %45 = math.exp %44 : vector<16x2xf32>
    %46 = math.log1p %45 : vector<16x2xf32>
    %47 = arith.addf %41, %46 : vector<16x2xf32>
    %c0_28 = arith.constant 0 : index
    %c0_29 = arith.constant 0 : index
    %48 = vector.load %arg11[%c0_28, %c0_29] : memref<16x2xf32, #tpu.memory_space<vmem>>, vector<16x2xf32>
    tpu.vector_store %arg11[%c0_28, %c0_29], %47 {strides = array<i32>} : memref<16x2xf32, #tpu.memory_space<vmem>>, vector<16x2xf32>,
    return
  }
  func.func @transform_0(%arg0: i32) -> (i32, i32) {
    %c0_i32 = arith.constant 0 : i32
    %c0_i32_0 = arith.constant 0 : i32
    return %arg0, %c0_i32 : i32, i32
  }
  func.func @transform_1(%arg0: i32) -> (i32, i32) {
    %c0_i32 = arith.constant 0 : i32
    %c0_i32_0 = arith.constant 0 : i32
    %c0_i32_1 = arith.constant 0 : i32
    return %c0_i32, %c0_i32_0 : i32, i32
  }
  func.func @transform_2(%arg0: i32) -> (i32, i32) {
    %c0_i32 = arith.constant 0 : i32
    %c0_i32_0 = arith.constant 0 : i32
    %c0_i32_1 = arith.constant 0 : i32
    return %c0_i32, %c0_i32_0 : i32, i32
  }
  func.func @transform_3(%arg0: i32) -> (i32, i32) {
    %c0_i32 = arith.constant 0 : i32
    %c0_i32_0 = arith.constant 0 : i32
    %c0_i32_1 = arith.constant 0 : i32
    return %c0_i32, %c0_i32_0 : i32, i32
  }
  func.func @transform_4(%arg0: i32) -> (i32, i32) {
    %c0_i32 = arith.constant 0 : i32
    %c0_i32_0 = arith.constant 0 : i32
    %c0_i32_1 = arith.constant 0 : i32
    return %c0_i32, %c0_i32_0 : i32, i32
  }
  func.func @transform_5(%arg0: i32) -> (i32, i32) {
    %c0_i32 = arith.constant 0 : i32
    %c0_i32_0 = arith.constant 0 : i32
    %c0_i32_1 = arith.constant 0 : i32
    return %c0_i32, %c0_i32_0 : i32, i32
  }
  func.func @transform_6(%arg0: i32) -> (i32, i32) {
    %c0_i32 = arith.constant 0 : i32
    %c0_i32_0 = arith.constant 0 : i32
    %c0_i32_1 = arith.constant 0 : i32
    return %c0_i32, %c0_i32_0 : i32, i32
  }
  func.func @transform_7(%arg0: i32) -> (i32, i32) {
    %c0_i32 = arith.constant 0 : i32
    %c0_i32_0 = arith.constant 0 : i32
    %c0_i32_1 = arith.constant 0 : i32
    return %c0_i32, %c0_i32_0 : i32, i32
  }
  func.func @transform_8(%arg0: i32) -> (i32, i32) {
    %c0_i32 = arith.constant 0 : i32
    %c0_i32_0 = arith.constant 0 : i32
    %c0_i32_1 = arith.constant 0 : i32
    return %c0_i32, %c0_i32_0 : i32, i32
  }
  func.func @transform_9(%arg0: i32) -> (i32, i32) {
    %c0_i32 = arith.constant 0 : i32
    %c0_i32_0 = arith.constant 0 : i32
    return %arg0, %c0_i32 : i32, i32
  }
  func.func @transform_10(%arg0: i32) -> (i32, i32) {
    %c0_i32 = arith.constant 0 : i32
    %c0_i32_0 = arith.constant 0 : i32
    return %arg0, %c0_i32 : i32, i32
  }
}

</mosaic_0001>

<bundles_post_ra>
// kernel: stochastic_mlc_forward.1
= control target key start
LH: loop header
LB: loop body
LE: loop exit
PB: predicated region body
PF: predicated region fallthrough
CT: control target
= control target key end

     0   :  { %16 = vsyncpa [#allocation3], 0  ;;  %s985_s0 = inlined_call_operand.vmem [shape: f32[16,32], index: 0, kind: input, shape index: {}]   ;;  %s986_s1 = inlined_call_operand.vmem [shape: bf16[32,128], index: 1, kind: input, shape index: {}]   ;;  %s987_s2 = inlined_call_operand.vmem [shape: f32[1,128], index: 2, kind: input, shape index: {}]   ;;  %s988_s3 = inlined_call_operand.hbm [shape: bf16[128,128], index: 3, kind: input, shape index: {}]   ;;  %s989_s4 = inlined_call_operand.vmem [shape: f32[1,128], index: 4, kind: input, shape index: {}]   ;;  %s990_s5 = inlined_call_operand.hbm [shape: bf16[128,128], index: 5, kind: input, shape index: {}]   ;;  %s991_s6 = inlined_call_operand.vmem [shape: f32[1,128], index: 6, kind: input, shape index: {}]   ;;  %s992_s7 = inlined_call_operand.hbm [shape: bf16[128,128], index: 7, kind: input, shape index: {}]   ;;  %s993_s8 = inlined_call_operand.vmem [shape: f32[1,128], index: 8, kind: input, shape index: {}]   ;;  %s994_s9 = inlined_call_operand.vmem [shape: f32[16,2], index: 9, kind: output, shape index: {0}]   ;;  %s995_s10 = inlined_call_operand.vmem [shape: f32[16,2], index: 10, kind: output, shape index: {1}]  }
   0x1   :  { %17 = vsyncpa [#allocation5], 0  ;;  %s796_s13 = smov [#allocation4]   ;;  %s797_s15 = smov [#allocation2]  }
   0x2   :  { %s43_s14 = sshll.u32 %s796_s13, 4  ;;  %s29_s16 = sshll.u32 %s797_s15, 4  ;;  %s44_s14 = int_to_ptr.vmem [resolvable:$true] %s43_s14  ;;  %s859_s16 = int_to_ptr.vmem [resolvable:$true] %s29_s16 }
   0x3   :  { %s726_s19 = scalar_lea.hbm %s990_s5, 1024 }
   0x4   :  { %p727_p0 = scmp.ne.s32.totalorder %s990_s5, %s726_s19  ;;  %p730_p1 = scmp.lt.u32.totalorder %s726_s19, %s990_s5 }
   0x6   :  { %p732_p2 = pnand %p730_p1, %p727_p0 }
   0x8   :  { %735 = shalt.err (!%p732_p2)
}
   0x9   :  { %s736_s24 = scalar_lea.vmem %s44_s14, 1024  ;;  %p741_p4 = scmp.lt.s32.totalorder %s44_s14, %s44_s14 }
   0xa   :  { %p737_p3 = scmp.ne.s32.totalorder %s44_s14, %s736_s24  ;;  %p742_p5 = scmp.lt.s32.totalorder %s736_s24, %s736_s24 }
   0xc   :  { %p743_p6 = por %p742_p5, %p741_p4 }
   0xe   :  { %p744_p7 = pnand %p743_p6, %p737_p3 }
  0x10   :  { %747 = shalt.err (!%p744_p7)
}
  0x11   :  { %s798_s25 = smov 64   ;;  %s799_s26 = smov 4  }
  0x12   :  { %49 = dma.hbm_to_vmem [thread:$0]  %s990_s5, 1024, %s44_s14, [#allocation5], %s798_s25, %s798_s25, %s799_s26  }
  0x13   :  { %s748_s11 = scalar_lea.hbm %s988_s3, 1024 }
  0x14   :  { %p749_p8 = scmp.ne.s32.totalorder %s988_s3, %s748_s11  ;;  %p752_p9 = scmp.lt.u32.totalorder %s748_s11, %s988_s3 }
  0x16   :  { %p754_p10 = pnand %p752_p9, %p749_p8 }
  0x18   :  { %757 = shalt.err (!%p754_p10)
}
  0x19   :  { %s758_s18 = scalar_lea.vmem %s859_s16, 1024  ;;  %p763_p12 = scmp.lt.s32.totalorder %s859_s16, %s859_s16 }
  0x1a   :  { %p759_p11 = scmp.ne.s32.totalorder %s859_s16, %s758_s18  ;;  %p764_p13 = scmp.lt.s32.totalorder %s758_s18, %s758_s18 }
  0x1c   :  { %p765_p0 = por %p764_p13, %p763_p12 }
  0x1e   :  { %p766_p1 = pnand %p765_p0, %p759_p11 }
  0x20   :  { %769 = shalt.err (!%p766_p1)
}
  0x21   :  { %35 = dma.hbm_to_vmem [thread:$0]  %s988_s3, 1024, %s859_s16, [#allocation3], %s798_s25, %s798_s25, %s799_s26  }
  0x22   :  { %s800_s19 = smov [#allocation6]   ;;  %s770_s23 = scalar_lea.hbm %s992_s7, 1024 }
  0x23   :  { %s57_s20 = sshll.u32 %s800_s19, 4  ;;  %p771_p2 = scmp.ne.s32.totalorder %s992_s7, %s770_s23  ;;  %s58_s20 = int_to_ptr.vmem [resolvable:$true] %s57_s20 }
  0x24   :  { %p774_p3 = scmp.lt.u32.totalorder %s770_s23, %s992_s7 }
  0x26   :  { %p776_p4 = pnand %p774_p3, %p771_p2 }
  0x28   :  { %779 = shalt.err (!%p776_p4)
}
  0x29   :  { %s780_s30 = scalar_lea.vmem %s58_s20, 1024  ;;  %p785_p6 = scmp.lt.s32.totalorder %s58_s20, %s58_s20 }
  0x2a   :  { %p781_p5 = scmp.ne.s32.totalorder %s58_s20, %s780_s30  ;;  %p786_p7 = scmp.lt.s32.totalorder %s780_s30, %s780_s30 }
  0x2c   :  { %p787_p8 = por %p786_p7, %p785_p6 }
  0x2e   :  { %p788_p9 = pnand %p787_p8, %p781_p5 }
  0x30   :  { %791 = shalt.err (!%p788_p9)
}
  0x31   :  { %63 = dma.hbm_to_vmem [thread:$0]  %s992_s7, 1024, %s58_s20, [#allocation5], %s798_s25, %s798_s25, %s799_s26  }
  0x32   :  { %792 = dma.done.wait [#allocation3], 1024  }
  0x33   :  { %793 = vsyncadd [#allocation3], 4294966272 }
  0x34   :  { %794 = dma.done.wait [#allocation5], 2048  }
  0x35   :  { %795 = vsyncadd [#allocation5], 4294965248  ;;  %v801_v0 = vmov 0.0   ;;  %vm802_vm0 = vmmov 0   ;;  %v692_v1 = vld [vmem:[%s986_s1] sm:$0xff]   ;;  %v693_v2 = vld [vmem:[%s986_s1 + $0x8] sm:$0xff]  }
  0x36   :  { %616 = vmatprep.subr.bf16.mxu0 %v801_v0  ;;  %620 = vmatprep.mubr.msk.bf16.mxu0 %vm802_vm0, %v801_v0  ;;  %v76_v3 = vld [vmem:[%s985_s0] sm:$0xff]  ;;  %v77_v4 = vld [vmem:[%s985_s0 + $0x8] sm:$0xff]  ;;  %vm102_vm1 = vcmask 261120   ;;  %v696_v8 = vld [vmem:[#allocation2 + $0x10] sm:$0xff]   ;;  %vm502_vm2 = vcmask 15360  }
  0x37   :  { %624 = vmatprep.subr.bf16.mxu1 %v801_v0  ;;  %640 = vmatprep.mubr.msk.bf16.mxu1 %vm802_vm0, %v801_v0  ;;  %v694_v5 = vld [vmem:[#allocation2] sm:$0xff]   ;;  %v78_v6 = vpack.c.bf16 %v77_v4, %v76_v3  ;;  %v695_v7 = vld [vmem:[#allocation2 + $0x8] sm:$0xff]   ;;  %v697_v9 = vld [vmem:[#allocation2 + $0x18] sm:$0xff]  }
  0x38   :  { %617 = vmatpush3.bf16.msra.mxu0 %v692_v1  ;;  %625 = vmatpush3.bf16.msra.mxu1 %v694_v5  ;;  %v698_v10 = vld [vmem:[#allocation2 + $0x20] sm:$0xff]   ;;  %v699_v11 = vld [vmem:[#allocation2 + $0x28] sm:$0xff]   ;;  %v700_v12 = vld [vmem:[#allocation2 + $0x30] sm:$0xff]  }
  0x39   :  { %618 = vmatprep.subr.bf16.mxu0 %v801_v0  ;;  %626 = vmatprep.subr.bf16.mxu1 %v801_v0  ;;  %v701_v13 = vld [vmem:[#allocation2 + $0x38] sm:$0xff]   ;;  %v702_v14 = vld [vmem:[#allocation4] sm:$0xff]   ;;  %v703_v15 = vld [vmem:[#allocation4 + $0x8] sm:$0xff]  }
  0x3a   :  { %v704_v16 = vld [vmem:[#allocation4 + $0x10] sm:$0xff]   ;;  %v705_v17 = vld [vmem:[#allocation4 + $0x18] sm:$0xff]   ;;  %v706_v18 = vld [vmem:[#allocation4 + $0x20] sm:$0xff]  }
  0x3b   :  { %v555_v19 = vld [vmem:[%s987_s2] ss:$0 sm:$0xff]  ;;  %v707_v31 = vld [vmem:[#allocation4 + $0x28] sm:$0xff]   ;;  %v708_v32 = vld [vmem:[#allocation4 + $0x30] sm:$0xff]  }
  0x3c   :  { %619 = vmatpush3.bf16.msra.mxu0 %v693_v2  ;;  %627 = vmatpush3.bf16.msra.mxu1 %v695_v7  ;;  %v709_v33 = vld [vmem:[#allocation4 + $0x38] sm:$0xff]   ;;  %v710_v34 = vld [vmem:[#allocation6] sm:$0xff]   ;;  %v711_v35 = vld [vmem:[#allocation6 + $0x8] sm:$0xff]  }
  0x3d   :  { %644 = vmatprep.subr.bf16.mxu0 %v801_v0  ;;  %628 = vmatprep.subr.bf16.mxu1 %v801_v0  ;;  %v712_v36 = vld [vmem:[#allocation6 + $0x10] sm:$0xff]   ;;  %v713_v37 = vld [vmem:[#allocation6 + $0x18] sm:$0xff]   ;;  %v714_v38 = vld [vmem:[#allocation6 + $0x20] sm:$0xff]  }
  0x3e   :  { %v559_v39 = vld [vmem:[%s989_s4] ss:$0 sm:$0xff]  ;;  %v715_v51 = vld [vmem:[#allocation6 + $0x28] sm:$0xff]   ;;  %v716_v52 = vld [vmem:[#allocation6 + $0x30] sm:$0xff]  }
  0x3f   :  { %621 = vmatmul.mubr.msk.bf16.vlgmr.msra.gmra.mrb[0].mxu0 %vm102_vm1, %v78_v6  ;;  %v717_v53 = vld [vmem:[#allocation6 + $0x38] sm:$0xff]   ;;  %v568_v54 = vld [vmem:[%s991_s6] ss:$0 sm:$0xff] }
  0x40   :  { %660 = vmatprep.mubr.msk.bf16.mxu0 %vm802_vm0, %v801_v0  ;;  %629 = vmatpush3.bf16.msra.mxu1 %v696_v8 }
  0x41   :  { %630 = vmatprep.subr.bf16.mxu1 %v801_v0  ;;  %645 = vmatpush3.bf16.msra.mxu0 %v702_v14 }
  0x42   :  { %646 = vmatprep.subr.bf16.mxu0 %v801_v0 }
  0x44   :  { %631 = vmatpush3.bf16.msra.mxu1 %v697_v9 }
  0x45   :  { %632 = vmatprep.subr.bf16.mxu1 %v801_v0  ;;  %647 = vmatpush3.bf16.msra.mxu0 %v703_v15 }
  0x46   :  { %648 = vmatprep.subr.bf16.mxu0 %v801_v0 }
  0x48   :  { %633 = vmatpush3.bf16.msra.mxu1 %v698_v10 }
  0x49   :  { %634 = vmatprep.subr.bf16.mxu1 %v801_v0  ;;  %649 = vmatpush3.bf16.msra.mxu0 %v704_v16 }
  0x4a   :  { %650 = vmatprep.subr.bf16.mxu0 %v801_v0 }
  0x4c   :  { %635 = vmatpush3.bf16.msra.mxu1 %v699_v11 }
  0x4d   :  { %636 = vmatprep.subr.bf16.mxu1 %v801_v0  ;;  %651 = vmatpush3.bf16.msra.mxu0 %v705_v17 }
  0x4e   :  { %652 = vmatprep.subr.bf16.mxu0 %v801_v0 }
  0x50   :  { %637 = vmatpush3.bf16.msra.mxu1 %v700_v12 }
  0x51   :  { %638 = vmatprep.subr.bf16.mxu1 %v801_v0  ;;  %653 = vmatpush3.bf16.msra.mxu0 %v706_v18 }
  0x52   :  { %654 = vmatprep.subr.bf16.mxu0 %v801_v0 }
  0x54   :  { %639 = vmatpush3.bf16.msra.mxu1 %v701_v13 }
  0x55   :  { %664 = vmatprep.subr.bf16.mxu1 %v801_v0  ;;  %655 = vmatpush3.bf16.msra.mxu0 %v707_v31 }
  0x56   :  { %656 = vmatprep.subr.bf16.mxu0 %v801_v0 }
  0x59   :  { %657 = vmatpush3.bf16.msra.mxu0 %v708_v32 }
  0x5a   :  { %658 = vmatprep.subr.bf16.mxu0 %v801_v0 }
  0x5d   :  { %659 = vmatpush3.bf16.msra.mxu0 %v709_v33 }
 0x112   :  { %v140_v20 = vpop.f32.mrb[0].mxu0 }
 0x113   :  { %v141_v21 = vadd.f32 %v555_v19, %v140_v20  ;;  %v622_v22 = vpop.f32.mrb[1].mxu0 }
 0x114   :  { %v143_v23 = vpop.f32.mrb[2].mxu0 }
 0x115   :  { %v147_v24 = vmul.f32 0.01, %v141_v21  ;;  %v144_v25 = vadd.f32 %v555_v19, %v143_v23  ;;  %v623_v26 = vpop.f32.mrb[3].mxu0 }
 0x117   :  { %v148_v27 = vmul.f32 0.01, %v144_v25  ;;  %v149_v28 = vmax.f32 %v141_v21, %v147_v24 }
 0x119   :  { %v150_v29 = vmax.f32 %v144_v25, %v148_v27 }
 0x11b   :  { %v151_v30 = vpack.c.bf16 %v150_v29, %v149_v28 }
 0x11d   :  { %641 = vmatmul.mubr.bf16.vlgmr.msra.gmra.mrb[0].mxu1 %v151_v30 }
 0x11e   :  { %680 = vmatprep.mubr.msk.bf16.mxu1 %vm802_vm0, %v801_v0  ;;  %665 = vmatpush3.bf16.msra.mxu1 %v710_v34 }
 0x11f   :  { %666 = vmatprep.subr.bf16.mxu1 %v801_v0 }
 0x122   :  { %667 = vmatpush3.bf16.msra.mxu1 %v711_v35 }
 0x123   :  { %668 = vmatprep.subr.bf16.mxu1 %v801_v0 }
 0x126   :  { %669 = vmatpush3.bf16.msra.mxu1 %v712_v36 }
 0x127   :  { %670 = vmatprep.subr.bf16.mxu1 %v801_v0 }
 0x12a   :  { %671 = vmatpush3.bf16.msra.mxu1 %v713_v37 }
 0x12b   :  { %672 = vmatprep.subr.bf16.mxu1 %v801_v0 }
 0x12e   :  { %673 = vmatpush3.bf16.msra.mxu1 %v714_v38 }
 0x12f   :  { %674 = vmatprep.subr.bf16.mxu1 %v801_v0 }
 0x132   :  { %675 = vmatpush3.bf16.msra.mxu1 %v715_v51 }
 0x133   :  { %676 = vmatprep.subr.bf16.mxu1 %v801_v0 }
 0x136   :  { %677 = vmatpush3.bf16.msra.mxu1 %v716_v52 }
 0x137   :  { %678 = vmatprep.subr.bf16.mxu1 %v801_v0  ;;  %v577_v0 = vld [vmem:[%s993_s8] ss:$0 sm:$0xff] }
 0x13a   :  { %679 = vmatpush3.bf16.msra.mxu1 %v717_v53 }
 0x1f0   :  { %v257_v40 = vpop.f32.mrb[0].mxu1 }
 0x1f1   :  { %v258_v41 = vadd.f32 %v559_v39, %v257_v40  ;;  %v642_v42 = vpop.f32.mrb[1].mxu1 }
 0x1f2   :  { %v260_v43 = vpop.f32.mrb[2].mxu1 }
 0x1f3   :  { %v264_v44 = vmul.f32 0.01, %v258_v41  ;;  %v261_v45 = vadd.f32 %v559_v39, %v260_v43  ;;  %v643_v46 = vpop.f32.mrb[3].mxu1 }
 0x1f5   :  { %v265_v47 = vmul.f32 0.01, %v261_v45  ;;  %v266_v48 = vmax.f32 %v258_v41, %v264_v44 }
 0x1f7   :  { %v267_v49 = vmax.f32 %v261_v45, %v265_v47 }
 0x1f9   :  { %v268_v50 = vpack.c.bf16 %v267_v49, %v266_v48 }
 0x1fb   :  { %661 = vmatmul.mubr.bf16.vlgmr.msra.gmra.mrb[4].mxu0 %v268_v50 }
 0x2ce   :  { %v374_v55 = vpop.f32.mrb[4].mxu0 }
 0x2cf   :  { %v375_v56 = vadd.f32 %v568_v54, %v374_v55  ;;  %v662_v57 = vpop.f32.mrb[5].mxu0 }
 0x2d0   :  { %v377_v58 = vpop.f32.mrb[6].mxu0 }
 0x2d1   :  { %v381_v59 = vmul.f32 0.01, %v375_v56  ;;  %v378_v60 = vadd.f32 %v568_v54, %v377_v58  ;;  %v663_v61 = vpop.f32.mrb[7].mxu0 }
 0x2d3   :  { %v382_v62 = vmul.f32 0.01, %v378_v60  ;;  %v383_v63 = vmax.f32 %v375_v56, %v381_v59 }
 0x2d5   :  { %v384_v1 = vmax.f32 %v378_v60, %v382_v62 }
 0x2d7   :  { %v385_v2 = vpack.c.bf16 %v384_v1, %v383_v63 }
 0x2d9   :  { %681 = vmatmul.mubr.bf16.vlgmr.msra.gmra.mrb[4].mxu1 %v385_v2 }
 0x3ac   :  { %v491_v3 = vpop.f32.mrb[4].mxu1 }
 0x3ad   :  { %v492_v4 = vadd.f32 %v577_v0, %v491_v3  ;;  %v682_v5 = vpop.f32.mrb[5].mxu1 }
 0x3ae   :  { %v494_v6 = vpop.f32.mrb[6].mxu1 }
 0x3af   :  { %v498_v7 = vmul.f32 0.01, %v492_v4  ;;  %v507_v8 = vand.u32 2147483647, %v492_v4  ;;  %v495_v9 = vadd.f32 %v577_v0, %v494_v6  ;;  %v683_v10 = vpop.f32.mrb[7].mxu1  ;;  %v505_v33 = vmax.f32 %v492_v4, 0.0 }
 0x3b1   :  { %v500_v11 = vmax.f32 %v492_v4, %v498_v7  ;;  %v509_v12 = vsub.f32 0.0, %v507_v8  ;;  %v499_v13 = vmul.f32 0.01, %v495_v9  ;;  %v508_v14 = vand.u32 2147483647, %v495_v9 }
 0x3b2   :  { %v506_v39 = vmax.f32 %v495_v9, 0.0 }
 0x3b3   :  { %v511_v15 = vmul.f32 1.442695, %v509_v12  ;;  %v501_v16 = vmax.f32 %v495_v9, %v499_v13  ;;  %v510_v17 = vsub.f32 0.0, %v508_v14  ;;  %503 = vst.msk [vmem:[%s994_s9] sm:$0xff] %vm502_vm2, %v500_v11 }
 0x3b5   :  { %718 = vpow2.f32 %v511_v15  ;;  %v513_v18 = vmul.f32 1.442695, %v510_v17  ;;  %504 = vst.msk [vmem:[%s994_s9 + $0x8] sm:$0xff] %vm502_vm2, %v501_v16  ;;  %s803_s9 = smov 126  }
 0x3b7   :  { %720 = vpow2.f32 %v513_v18 }
 0x3bf   :  { %v719_v19 = vpop.eup %718 }
 0x3c0   :  { %v515_v20 = vadd.f32 1.0, %v719_v19  ;;  %v518_v23 = vmul.f32 -0.5, %v719_v19  ;;  %v521_v26 = vand.u32 2147483647, %v719_v19 }
 0x3c1   :  { %v721_v21 = vpop.eup %720 }
 0x3c2   :  { %722 = vlog2.f32 %v515_v20  ;;  %v524_v22 = vadd.f32 1.0, %v721_v21  ;;  %v527_v24 = vmul.f32 -0.5, %v721_v21  ;;  %v519_v25 = vadd.f32 1.0, %v518_v23 }
 0x3c3   :  { %v530_v29 = vand.u32 2147483647, %v721_v21  ;;  %vm522_vm3 = vcmp.lt.f32.partialorder %v521_v26, 0.0004427343 }
 0x3c4   :  { %724 = vlog2.f32 %v524_v22  ;;  %v528_v27 = vadd.f32 1.0, %v527_v24  ;;  %v520_v31 = vmul.f32 %v719_v19, %v519_v25 }
 0x3c5   :  { %vm531_vm4 = vcmp.lt.f32.partialorder %v530_v29, 0.0004427343 }
 0x3c6   :  { %v529_v36 = vmul.f32 %v721_v21, %v528_v27 }
 0x3cc   :  { %v723_v28 = vpop.eup %722 }
 0x3cd   :  { %v517_v30 = vmul.f32 0.6931472, %v723_v28 }
 0x3ce   :  { %v725_v32 = vpop.eup %724 }
 0x3cf   :  { %v523_v34 = vsel %vm522_vm3, %v520_v31, %v517_v30  ;;  %v526_v35 = vmul.f32 0.6931472, %v725_v32 }
 0x3d0   :  { %v533_v37 = vadd.f32 %v523_v34, %v505_v33 }
 0x3d1   :  { %v532_v38 = vsel %vm531_vm4, %v529_v36, %v526_v35 }
 0x3d2   :  { %537 = vrot.lane.b32.xlu0 %v533_v37, %s803_s9  ;;  %v534_v40 = vadd.f32 %v532_v38, %v506_v39 }
 0x3d6   :  { %539 = vrot.lane.b32.xlu0 %v534_v40, %s803_s9 }
 0x444   :  { %v538_v41 = vpop.permute.xlu0 %537 }
 0x445   :  { %543 = vst.msk [vmem:[%s995_s10] sm:$0xff] %vm502_vm2, %v538_v41 }
 0x448   :  { %v540_v42 = vpop.permute.xlu0 %539 }
 0x449   :  { %544 = vst.msk [vmem:[%s995_s10 + $0x8] sm:$0xff] %vm502_vm2, %v540_v42 }
 0x44a   :  { %553 = vsyncpa [#allocation3], 1 }
 0x44b   :  { %554 = vsyncpa [#allocation5], 1 }

</bundles_post_ra>
